<compile_context>
chip_gen: v7x
topology: tpu7x:2x2x1
jax: 0.10.0
libtpu: 0.0.40
codegen_flags: <defaults>
</compile_context>

<pallas_src>
import jax
import jax.numpy as jnp
from jax.experimental import pallas as pl
from jax.experimental.pallas import tpu as pltpu

_EPS = 1e-6  # torch.nn.PairwiseDistance default eps (added to the difference)


def _pairwise_l2_kernel(src_ref, tgt_ref, out_ref):
    # src_ref, tgt_ref: (TB, D) VMEM tiles; out_ref: (TB, 1)
    diff = src_ref[...].astype(jnp.float32) - tgt_ref[...].astype(jnp.float32) + _EPS
    out_ref[...] = jnp.sqrt(
        jnp.sum(diff * diff, axis=-1, keepdims=True)
    ).astype(out_ref.dtype)


def _sublane_multiple(dtype) -> int:
    # f32 -> 8 rows/vreg, bf16 -> 16, int8/fp8 -> 32
    return max(8, 32 // jnp.dtype(dtype).itemsize)


def _pick_batch_tile(B: int, D: int, dtype,
                     tile_budget_bytes: int = 3 * 1024 * 1024) -> int:
    """Rows per grid step.

    2 inputs x 2 pipeline buffers x TB x D x itemsize <= ~12 MiB keeps us inside
    the default scoped-VMEM budget of every generation (v5e 16 MiB, v6e 32 MiB,
    v7x 32 MiB of 64 MiB physical) while staying large enough (>=512 rows for
    typical D) to amortize the ~0.35 us per-step overhead on this purely
    HBM-bandwidth-bound loop.
    """
    itemsize = jnp.dtype(dtype).itemsize
    mult = _sublane_multiple(dtype)
    rows = tile_budget_bytes // max(1, D * itemsize)
    rows = min(rows, 2048)
    rows = max((rows // mult) * mult, mult)
    if rows >= B:
        return B  # single tile; block == full array dims is always legal
    return rows


def pairwise_l2_loss(source: jax.Array, target: jax.Array,
                     batch_tile: int | None = None) -> jax.Array:
    """Equivalent of torch.nn.PairwiseDistance(p=2)(source, target).

    source, target: (B, D)  ->  returns (B,) in the (promoted) input dtype.
    """
    assert source.shape == target.shape and source.ndim == 2
    B, D = source.shape
    in_dtype = jnp.result_type(source.dtype, target.dtype)
    out_dtype = in_dtype if jnp.issubdtype(in_dtype, jnp.floating) else jnp.float32

    TB = batch_tile if batch_tile is not None else _pick_batch_tile(B, D, in_dtype)
    TB = min(TB, B)
    grid = (pl.cdiv(B, TB),)

    out = pl.pallas_call(
        _pairwise_l2_kernel,
        out_shape=jax.ShapeDtypeStruct((B, 1), out_dtype),
        grid_spec=pltpu.PrefetchScalarGridSpec(
            num_scalar_prefetch=0,
            grid=grid,
            in_specs=[
                pl.BlockSpec((TB, D), lambda i: (i, 0)),
                pl.BlockSpec((TB, D), lambda i: (i, 0)),
            ],
            out_specs=pl.BlockSpec((TB, 1), lambda i: (i, 0)),
        ),
        compiler_params=pltpu.CompilerParams(
            # batch tiles are independent -> megacore-shardable (2 TCs on v7x)
            dimension_semantics=("parallel",),
        ),
    )(source, target)
    return out[:, 0]


def _reference(source, target):
    diff = source.astype(jnp.float32) - target.astype(jnp.float32) + _EPS
    return jnp.sqrt(jnp.sum(diff * diff, axis=-1))


if __name__ == "__main__":
    key = jax.random.PRNGKey(0)

    # Demo shape consistent with the module: batch=8, hidden=32.
    k1, k2 = jax.random.split(key)
    B, D = 8, 32
    source = jax.random.normal(k1, (B, D), dtype=jnp.float32)
    target = jax.random.normal(k2, (B, D), dtype=jnp.float32)

    loss = pairwise_l2_loss(source, target)
    jax.block_until_ready(loss)
    ref = _reference(source, target)
    assert loss.shape == (B,)
    assert jnp.allclose(loss, ref.astype(loss.dtype), atol=1e-5, rtol=1e-5), (loss, ref)

    # Exercise the multi-tile + ragged-last-tile path (B=20 with TB=8 -> 3 steps,
    # last block partially out of bounds; padded rows are masked on store).
    k3, k4 = jax.random.split(k2)
    B2, D2 = 20, 32
    src2 = jax.random.normal(k3, (B2, D2), dtype=jnp.float32)
    tgt2 = jax.random.normal(k4, (B2, D2), dtype=jnp.float32)
    loss2 = pairwise_l2_loss(src2, tgt2, batch_tile=8)
    jax.block_until_ready(loss2)
    ref2 = _reference(src2, tgt2)
    assert loss2.shape == (B2,)
    assert jnp.allclose(loss2, ref2.astype(loss2.dtype), atol=1e-5, rtol=1e-5), (loss2, ref2)

    print("KERNEL_OK")
</pallas_src>

<mosaic_0001>
module attributes {stable_mosaic.version = 11 : i64} {
  func.func @_pairwise_l2_kernel(%arg0: i32, %arg1: memref<8x32xf32, #tpu.memory_space<vmem>>, %arg2: memref<8x32xf32, #tpu.memory_space<vmem>>, %arg3: memref<8x1xf32, #tpu.memory_space<vmem>>) attributes {dimension_semantics = [#tpu.dimension_semantics<parallel>], iteration_bounds = array<i64: 1>, scalar_prefetch = 0 : i64, scratch_operands = 0 : i64, tpu.core_type = #tpu.core_type<tc>, window_params = [{transform_indices = @transform_0, window_bounds = array<i64: 8, 32>}, {transform_indices = @transform_1, window_bounds = array<i64: 8, 32>}, {transform_indices = @transform_2, window_bounds = array<i64: 8, 1>}]} {
    %c0 = arith.constant 0 : index
    %c0_0 = arith.constant 0 : index
    %0 = vector.load %arg1[%c0, %c0_0] : memref<8x32xf32, #tpu.memory_space<vmem>>, vector<8x32xf32>
    %c0_1 = arith.constant 0 : index
    %c0_2 = arith.constant 0 : index
    %1 = vector.load %arg2[%c0_1, %c0_2] : memref<8x32xf32, #tpu.memory_space<vmem>>, vector<8x32xf32>
    %2 = arith.subf %0, %1 : vector<8x32xf32>
    %cst = arith.constant 9.99999997E-7 : f32
    %3 = vector.broadcast %cst : f32 to vector<8x32xf32>
    %4 = arith.addf %2, %3 : vector<8x32xf32>
    %5 = arith.mulf %4, %4 : vector<8x32xf32>
    %cst_3 = arith.constant dense<0.000000e+00> : vector<8xf32>
    %6 = vector.multi_reduction <add>, %5, %cst_3 [1] : vector<8x32xf32> to vector<8xf32>
    %7 = vector.shape_cast %6 : vector<8xf32> to vector<8x1xf32>
    %8 = math.sqrt %7 : vector<8x1xf32>
    %c0_4 = arith.constant 0 : index
    %c0_5 = arith.constant 0 : index
    %9 = vector.load %arg3[%c0_4, %c0_5] : memref<8x1xf32, #tpu.memory_space<vmem>>, vector<8x1xf32>
    tpu.vector_store %arg3[%c0_4, %c0_5], %8 {strides = array<i32>} : memref<8x1xf32, #tpu.memory_space<vmem>>, vector<8x1xf32>,
    return
  }
  func.func @transform_0(%arg0: i32) -> (i32, i32) {
    %c0_i32 = arith.constant 0 : i32
    %c0_i32_0 = arith.constant 0 : i32
    return %arg0, %c0_i32 : i32, i32
  }
  func.func @transform_1(%arg0: i32) -> (i32, i32) {
    %c0_i32 = arith.constant 0 : i32
    %c0_i32_0 = arith.constant 0 : i32
    return %arg0, %c0_i32 : i32, i32
  }
  func.func @transform_2(%arg0: i32) -> (i32, i32) {
    %c0_i32 = arith.constant 0 : i32
    %c0_i32_0 = arith.constant 0 : i32
    return %arg0, %c0_i32 : i32, i32
  }
}

</mosaic_0001>

<bundles_post_ra>
// kernel: tpu_custom_call.1
= control target key start
LH: loop header
LB: loop body
LE: loop exit
PB: predicated region body
PF: predicated region fallthrough
CT: control target
= control target key end

     0   :  { %7 = vsyncpa [#allocation3], 0  ;;  %s155_s0 = inlined_call_operand.hbm [shape: f32[8,32], index: 0, kind: input, shape index: {}]   ;;  %s156_s1 = inlined_call_operand.hbm [shape: f32[8,32], index: 1, kind: input, shape index: {}]   ;;  %s157_s2 = inlined_call_operand.vmem [shape: f32[8,1], index: 2, kind: output, shape index: {}]  }
   0x1   :  { %8 = vsyncpa [#allocation5], 0  ;;  %s111_s9 = smov [#allocation2]   ;;  %s112_s11 = smov [#allocation4]  }
   0x2   :  { %s15_s10 = sshll.u32 %s111_s9, 4  ;;  %s25_s12 = sshll.u32 %s112_s11, 4  ;;  %s16_s10 = int_to_ptr.vmem [resolvable:$true] %s15_s10  ;;  %s26_s12 = int_to_ptr.vmem [resolvable:$true] %s25_s12 }
   0x3   :  { %s63_s15 = scalar_lea.hbm %s155_s0, 128 }
   0x4   :  { %p64_p0 = scmp.ne.s32.totalorder %s155_s0, %s63_s15  ;;  %p67_p1 = scmp.lt.u32.totalorder %s63_s15, %s155_s0 }
   0x6   :  { %p69_p2 = pnand %p67_p1, %p64_p0 }
   0x8   :  { %72 = shalt.err (!%p69_p2)
}
   0x9   :  { %s73_s20 = scalar_lea.vmem %s16_s10, 128  ;;  %p78_p4 = scmp.lt.s32.totalorder %s16_s10, %s16_s10 }
   0xa   :  { %p74_p3 = scmp.ne.s32.totalorder %s16_s10, %s73_s20  ;;  %p79_p5 = scmp.lt.s32.totalorder %s73_s20, %s73_s20 }
   0xc   :  { %p80_p6 = por %p79_p5, %p78_p4 }
   0xe   :  { %p81_p7 = pnand %p80_p6, %p74_p3 }
  0x10   :  { %84 = shalt.err (!%p81_p7)
}
  0x11   :  { %18 = dma.hbm_to_vmem [thread:$0]  %s155_s0, 128, %s16_s10, [#allocation3]  }
  0x12   :  { %s85_s25 = scalar_lea.hbm %s156_s1, 128 }
  0x13   :  { %p86_p8 = scmp.ne.s32.totalorder %s156_s1, %s85_s25  ;;  %p89_p9 = scmp.lt.u32.totalorder %s85_s25, %s156_s1 }
  0x15   :  { %p91_p10 = pnand %p89_p9, %p86_p8 }
  0x17   :  { %94 = shalt.err (!%p91_p10)
}
  0x18   :  { %s95_s30 = scalar_lea.vmem %s26_s12, 128  ;;  %p100_p12 = scmp.lt.s32.totalorder %s26_s12, %s26_s12 }
  0x19   :  { %p96_p11 = scmp.ne.s32.totalorder %s26_s12, %s95_s30  ;;  %p101_p13 = scmp.lt.s32.totalorder %s95_s30, %s95_s30 }
  0x1b   :  { %p102_p0 = por %p101_p13, %p100_p12 }
  0x1d   :  { %p103_p1 = pnand %p102_p0, %p96_p11 }
  0x1f   :  { %106 = shalt.err (!%p103_p1)
}
  0x20   :  { %28 = dma.hbm_to_vmem [thread:$0]  %s156_s1, 128, %s26_s12, [#allocation5]  }
  0x21   :  { %107 = dma.done.wait [#allocation3], 128  }
  0x22   :  { %108 = vsyncadd [#allocation3], 4294967168 }
  0x23   :  { %109 = dma.done.wait [#allocation5], 128  }
  0x24   :  { %110 = vsyncadd [#allocation5], 4294967168  ;;  %v35_v0 = vld [vmem:[#allocation2] sm:$0xff]  ;;  %v36_v1 = vld [vmem:[#allocation4] sm:$0xff]  ;;  %vm40_vm0 = vcmask 261120   ;;  %vm51_vm2 = vcmask 7168  }
  0x25   :  { %v37_v2 = vsub.f32 %v35_v0, %v36_v1 }
  0x27   :  { %v38_v3 = vadd.f32 1e-06, %v37_v2 }
  0x29   :  { %v39_v4 = vmul.f32 %v38_v3, %v38_v3 }
  0x2b   :  { %v41_v5 = vsel %vm40_vm0, %v39_v4, 0.0 }
  0x2c   :  { %42 = vadd.xlane.f32.xlu0 %v41_v5 }
  0xb9   :  { %v43_v6 = vpop.xlane.xlu0 %42 }
  0xba   :  { %61 = vrsqrt.f32 %v43_v6  ;;  %vm46_vm1 = vcmp.eq.f32.partialorder %v43_v6, inf  ;;  %v49_v9 = vand.u32 2147483648, %v43_v6  ;;  %vm48_vm3 = vcmp.eq.f32.partialorder %v43_v6, 0.0 }
  0xc4   :  { %v62_v7 = vpop.eup %61 }
  0xc5   :  { %v45_v8 = vmul.f32 %v62_v7, %v43_v6 }
  0xc7   :  { %v47_v10 = vsel %vm46_vm1, %v43_v6, %v45_v8 }
  0xc8   :  { %v50_v11 = vsel %vm48_vm3, %v49_v9, %v47_v10 }
  0xc9   :  { %52 = vst.msk [vmem:[%s157_s2] sm:$0xff] %vm51_vm2, %v50_v11 }
  0xca   :  { %57 = vsyncpa [#allocation3], 1 }
  0xcb   :  { %58 = vsyncpa [#allocation5], 1 }

</bundles_post_ra>
